<compile_context>
chip_gen: v7x
topology: tpu7x:2x2x1
jax: 0.10.0
libtpu: 0.0.40
codegen_flags: <defaults>
</compile_context>

<pallas_src>
import functools
import math

import jax
import jax.numpy as jnp
import numpy as np
from jax import lax
from jax.experimental import pallas as pl
from jax.experimental.pallas import tpu as pltpu


def _lora_embedding_kernel(ids_ref,        # SMEM, (N_pad,) int32 token ids (scalar prefetch)
                           a_t_ref,        # VMEM, (V, r)  f32 = lora_embedding_A.T
                           b_t_ref,        # VMEM, (r, D)  bf16 = lora_embedding_B.T * scaling
                           base_hbm_ref,   # ANY/HBM, (V, D) base embedding table (native dtype)
                           out_ref,        # VMEM, (TILE_N, D) output tile
                           gbuf,           # VMEM scratch, (2, TILE_N, D) base-dtype gather buffer
                           a_rows,         # VMEM scratch, (TILE_N, r) f32 gathered A rows
                           sem,            # DMA semaphores, (2,)
                           *, tile_n: int):
    t = pl.program_id(0)
    n_tiles = pl.num_programs(0)
    slot = t % 2

    def start_fetch(tile_idx, slot_idx):
        base = tile_idx * tile_n

        @pl.loop(0, tile_n)
        def _(i):
            tok = ids_ref[base + i]
            pltpu.make_async_copy(
                base_hbm_ref.at[pl.ds(tok, 1), :],
                gbuf.at[slot_idx, pl.ds(i, 1), :],
                sem.at[slot_idx],
            ).start()

    # Prime the pipeline on the first grid step.
    @pl.when(t == 0)
    def _():
        start_fetch(0, 0)

    # Prefetch next tile's base rows into the other slot while we work on this one.
    @pl.when(t + 1 < n_tiles)
    def _():
        start_fetch(t + 1, (t + 1) % 2)

    # Gather the LoRA-A rows for this tile from the VMEM-resident A^T (overlaps with
    # the in-flight base-row DMAs).
    base_i = t * tile_n

    @pl.loop(0, tile_n)
    def _(i):
        tok = ids_ref[base_i + i]
        a_rows[pl.ds(i, 1), :] = a_t_ref[pl.ds(tok, 1), :]

    # LoRA hot path on the MXU: bf16 operands, f32 accumulation. Scaling was folded
    # into B^T in the wrapper, so no per-tile (TILE_N, D) multiply is needed.
    delta = jnp.dot(a_rows[...].astype(jnp.bfloat16), b_t_ref[...],
                    preferred_element_type=jnp.float32)

    # Wait for all tile_n base-row DMAs of the current slot. All row copies signal the
    # same per-slot semaphore; a single wait sized to the whole slot buffer covers them
    # (same pattern as the paged-attention MultiPage copy descriptor).
    pltpu.make_async_copy(gbuf.at[slot], gbuf.at[slot], sem.at[slot]).wait()

    out_ref[...] = (gbuf[slot].astype(jnp.float32) + delta).astype(out_ref.dtype)


def _round_up(x, m):
    return ((x + m - 1) // m) * m


def lora_embedding_forward(x, base_weight, lora_A, lora_B, lora_alpha,
                           *, tile_n=256, use_rslora=False):
    """x: (B, S) int ids. base_weight: (V, D). lora_A: (r, V). lora_B: (D, r)."""
    B, S = x.shape
    V, D = base_weight.shape
    r = lora_A.shape[0]
    scaling = float(lora_alpha) / (math.sqrt(r) if use_rslora else r)

    ids = x.reshape(-1).astype(jnp.int32)            # (N,)
    N = ids.shape[0]
    # Don't over-pad tiny inputs; keep tile a multiple of 8 (sublane).
    tile_n = min(tile_n, _round_up(N, 8))
    assert tile_n % 8 == 0
    n_tiles = (N + tile_n - 1) // tile_n
    n_pad = n_tiles * tile_n
    if n_pad != N:
        # Pad with token 0: always a valid row, so no OOB reads; rows sliced off below.
        ids = jnp.concatenate([ids, jnp.zeros((n_pad - N,), jnp.int32)])

    a_t = lora_A.T.astype(jnp.float32)               # (V, r)  small, VMEM-resident
    b_t = (lora_B.T * scaling).astype(jnp.bfloat16)  # (r, D)  scaling folded in once

    kernel = functools.partial(_lora_embedding_kernel, tile_n=tile_n)

    out_flat = pl.pallas_call(
        kernel,
        out_shape=jax.ShapeDtypeStruct((n_pad, D), base_weight.dtype),
        grid_spec=pltpu.PrefetchScalarGridSpec(
            num_scalar_prefetch=1,                   # ids -> SMEM
            grid=(n_tiles,),
            in_specs=[
                pl.BlockSpec((V, r), lambda t, ids: (0, 0)),   # A^T resident (small)
                pl.BlockSpec((r, D), lambda t, ids: (0, 0)),   # scaled B^T resident (small)
                pl.BlockSpec(memory_space=pl.ANY),             # base table stays in HBM
            ],
            out_specs=pl.BlockSpec((tile_n, D), lambda t, ids: (t, 0)),
            scratch_shapes=[
                pltpu.VMEM((2, tile_n, D), base_weight.dtype),  # double-buffered row gather
                pltpu.VMEM((tile_n, r), jnp.float32),           # gathered A rows
                pltpu.SemaphoreType.DMA((2,)),
            ],
        ),
        compiler_params=pltpu.CompilerParams(
            # Sequential grid required: the double-buffer / semaphore state is carried
            # across grid iterations.
            dimension_semantics=("arbitrary",),
            vmem_limit_bytes=64 * 1024 * 1024,
        ),
    )(ids, a_t, b_t, base_weight)

    out = out_flat[:N].reshape(B, S, D)
    # TODO(synk): faithful `result.to(x.dtype)` only makes sense for floating x.
    if jnp.issubdtype(x.dtype, jnp.floating):
        out = out.astype(x.dtype)
    return out


def _reference(x, base_weight, lora_A, lora_B, lora_alpha):
    """Pure-JAX reference with the same math (bf16 LoRA operands, f32 accumulation)."""
    B, S = x.shape
    D = base_weight.shape[1]
    r = lora_A.shape[0]
    scaling = lora_alpha / r
    a_bf = lora_A.T.astype(jnp.bfloat16)                 # (V, r)
    b_bf = (lora_B.T * scaling).astype(jnp.bfloat16)     # (r, D)
    delta = jnp.dot(a_bf[x].reshape(-1, r), b_bf,
                    preferred_element_type=jnp.float32).reshape(B, S, D)
    return base_weight[x] + delta


if __name__ == "__main__":
    # Small shapes implied by the module: vocab V, embedding dim D, LoRA rank r,
    # token ids x of shape (B, S).
    V, D, r = 32, 128, 8
    B, S = 2, 9            # N = 18 tokens -> exercises the padded tail tile
    lora_alpha = 16.0      # scaling = alpha / rank = 2.0

    key = jax.random.PRNGKey(0)
    k_w, k_a, k_b, k_x = jax.random.split(key, 4)
    base_weight = jax.random.normal(k_w, (V, D), dtype=jnp.float32)
    # NOTE: the module's default init zeroes lora_embedding_A (making the LoRA branch a
    # no-op); we use random values so the kernel's LoRA path is actually exercised.
    lora_A = jax.random.normal(k_a, (r, V), dtype=jnp.float32)   # (rank, num_embeddings)
    lora_B = jax.random.normal(k_b, (D, r), dtype=jnp.float32)   # (embedding_dim, rank)
    x = jax.random.randint(k_x, (B, S), 0, V, dtype=jnp.int32)

    ref = _reference(x, base_weight, lora_A, lora_B, lora_alpha)

    # Run 1: small tile -> multiple grid steps; exercises double-buffered DMA prefetch
    # and the padded tail at runtime.
    out_multi = lora_embedding_forward(x, base_weight, lora_A, lora_B, lora_alpha,
                                       tile_n=8)
    out_multi = jax.block_until_ready(out_multi)
    np.testing.assert_allclose(np.asarray(out_multi), np.asarray(ref),
                               rtol=1e-4, atol=1e-4)

    # Run 2: default (production-sized) tile; whole batch in a single grid step.
    out_single = lora_embedding_forward(x, base_weight, lora_A, lora_B, lora_alpha)
    out_single = jax.block_until_ready(out_single)
    np.testing.assert_allclose(np.asarray(out_single), np.asarray(ref),
                               rtol=1e-4, atol=1e-4)

    assert out_multi.shape == (B, S, D) and out_multi.dtype == base_weight.dtype
    print("KERNEL_OK")
</pallas_src>

<mosaic_0001>
module attributes {stable_mosaic.version = 11 : i64} {
  func.func @_lora_embedding_kernel(%arg0: i32, %arg1: memref<24xi32, #tpu.memory_space<smem>>, %arg2: memref<32x8xf32, #tpu.memory_space<vmem>>, %arg3: memref<8x128xbf16, #tpu.memory_space<vmem>>, %arg4: memref<32x128xf32, #tpu.memory_space<any>>, %arg5: memref<8x128xf32, #tpu.memory_space<vmem>>, %arg6: memref<2x8x128xf32, #tpu.memory_space<vmem>>, %arg7: memref<8x8xf32, #tpu.memory_space<vmem>>, %arg8: memref<2x!tpu.dma_semaphore, #tpu.memory_space<semaphore_mem>>) attributes {dimension_semantics = [#tpu.dimension_semantics<arbitrary>], iteration_bounds = array<i64: 3>, scalar_prefetch = 1 : i64, scratch_operands = 3 : i64, tpu.core_type = #tpu.core_type<tc>, window_params = [{pipeline_mode = #tpu.pipeline_mode<synchronous>, transform_indices = @transform_0, window_bounds = array<i64: 32, 8>}, {pipeline_mode = #tpu.pipeline_mode<synchronous>, transform_indices = @transform_1, window_bounds = array<i64: 8, 128>}, {}, {transform_indices = @transform_3, window_bounds = array<i64: 8, 128>}]} {
    %c2_i32 = arith.constant 2 : i32
    %c0_i32 = arith.constant 0 : i32
    %0 = arith.cmpi eq, %c2_i32, %c0_i32 : i32
    %c1_i32 = arith.constant 1 : i32
    %1 = arith.select %0, %c1_i32, %c2_i32 : i32
    %2 = arith.remsi %arg0, %1 : i32
    %c0_i32_0 = arith.constant 0 : i32
    %3 = arith.cmpi ne, %2, %c0_i32_0 : i32
    %c0_i32_1 = arith.constant 0 : i32
    %4 = arith.cmpi slt, %2, %c0_i32_1 : i32
    %c0_i32_2 = arith.constant 0 : i32
    %5 = arith.cmpi slt, %1, %c0_i32_2 : i32
    %6 = arith.xori %4, %5 : i1
    %7 = arith.andi %6, %3 : i1
    %8 = arith.addi %2, %1 : i32
    %9 = arith.select %7, %8, %2 : i32
    %c0_i32_3 = arith.constant 0 : i32
    %10 = arith.cmpi eq, %arg0, %c0_i32_3 : i32
    %11 = arith.extui %10 : i1 to i32
    %c0_i32_4 = arith.constant 0 : i32
    %12 = arith.cmpi ne, %11, %c0_i32_4 : i32
    scf.if %12 {
      %c0_i32_22 = arith.constant 0 : i32
      %c8_i32_23 = arith.constant 8 : i32
      %34 = arith.addi %c0_i32_22, %c8_i32_23 : i32
      %c1_i32_24 = arith.constant 1 : i32
      scf.for %arg9 = %c0_i32_22 to %34 step %c1_i32_24  : i32 {
        %c1_i32_26 = arith.constant 1 : i32
        %35 = arith.muli %arg9, %c1_i32_26 : i32
        %c0_i32_27 = arith.constant 0 : i32
        %36 = arith.addi %c0_i32_27, %35 : i32
        %c0_i32_28 = arith.constant 0 : i32
        %37 = arith.addi %c0_i32_28, %36 : i32
        %38 = arith.index_cast %37 : i32 to index
        %39 = memref.load %arg1[%38] : memref<24xi32, #tpu.memory_space<smem>>
        %c0_i32_29 = arith.constant 0 : i32
        %c0_i32_30 = arith.constant 0 : i32
        %c0_i32_31 = arith.constant 0 : i32
        %40 = tpu.memref_slice %arg4[%39, %c0_i32_31] : memref<32x128xf32, #tpu.memory_space<any>> -> memref<1x128xf32, #tpu.memory_space<any>>
        %c0_i32_32 = arith.constant 0 : i32
        %41 = tpu.memref_slice %arg6[%c0_i32_29, %36, %c0_i32_32] : memref<2x8x128xf32, #tpu.memory_space<vmem>> -> memref<1x1x128xf32, #tpu.memory_space<vmem>>
        %42 = tpu.memref_squeeze %41 : memref<1x1x128xf32, #tpu.memory_space<vmem>> -> memref<1x128xf32, #tpu.memory_space<vmem>>
        %43 = tpu.memref_slice %arg8[%c0_i32_30] : memref<2x!tpu.dma_semaphore, #tpu.memory_space<semaphore_mem>> -> memref<1x!tpu.dma_semaphore, #tpu.memory_space<semaphore_mem>>
        %44 = tpu.memref_squeeze %43 : memref<1x!tpu.dma_semaphore, #tpu.memory_space<semaphore_mem>> -> memref<!tpu.dma_semaphore, #tpu.memory_space<semaphore_mem>>
        tpu.enqueue_dma source(%40 : memref<1x128xf32, #tpu.memory_space<any>>) target(%42 : memref<1x128xf32, #tpu.memory_space<vmem>>) target_semaphore(%44 : memref<!tpu.dma_semaphore, #tpu.memory_space<semaphore_mem>>)
      }
      %c8_i32_25 = arith.constant 8 : i32
    } else {
    }
    %c1_i32_5 = arith.constant 1 : i32
    %13 = arith.addi %arg0, %c1_i32_5 : i32
    %c3_i32 = arith.constant 3 : i32
    %14 = arith.cmpi slt, %13, %c3_i32 : i32
    %15 = arith.extui %14 : i1 to i32
    %c0_i32_6 = arith.constant 0 : i32
    %16 = arith.cmpi ne, %15, %c0_i32_6 : i32
    scf.if %16 {
      %c1_i32_22 = arith.constant 1 : i32
      %34 = arith.addi %arg0, %c1_i32_22 : i32
      %c1_i32_23 = arith.constant 1 : i32
      %35 = arith.addi %arg0, %c1_i32_23 : i32
      %c2_i32_24 = arith.constant 2 : i32
      %c0_i32_25 = arith.constant 0 : i32
      %36 = arith.cmpi eq, %c2_i32_24, %c0_i32_25 : i32
      %c1_i32_26 = arith.constant 1 : i32
      %37 = arith.select %36, %c1_i32_26, %c2_i32_24 : i32
      %38 = arith.remsi %35, %37 : i32
      %c0_i32_27 = arith.constant 0 : i32
      %39 = arith.cmpi ne, %38, %c0_i32_27 : i32
      %c0_i32_28 = arith.constant 0 : i32
      %40 = arith.cmpi slt, %38, %c0_i32_28 : i32
      %c0_i32_29 = arith.constant 0 : i32
      %41 = arith.cmpi slt, %37, %c0_i32_29 : i32
      %42 = arith.xori %40, %41 : i1
      %43 = arith.andi %42, %39 : i1
      %44 = arith.addi %38, %37 : i32
      %45 = arith.select %43, %44, %38 : i32
      %c8_i32_30 = arith.constant 8 : i32
      %46 = arith.muli %34, %c8_i32_30 : i32
      %c0_i32_31 = arith.constant 0 : i32
      %c8_i32_32 = arith.constant 8 : i32
      %47 = arith.addi %c0_i32_31, %c8_i32_32 : i32
      %c1_i32_33 = arith.constant 1 : i32
      scf.for %arg9 = %c0_i32_31 to %47 step %c1_i32_33  : i32 {
        %c1_i32_35 = arith.constant 1 : i32
        %48 = arith.muli %arg9, %c1_i32_35 : i32
        %c0_i32_36 = arith.constant 0 : i32
        %49 = arith.addi %c0_i32_36, %48 : i32
        %50 = arith.addi %46, %49 : i32
        %51 = arith.index_cast %50 : i32 to index
        %52 = memref.load %arg1[%51] : memref<24xi32, #tpu.memory_space<smem>>
        %c0_i32_37 = arith.constant 0 : i32
        %53 = tpu.memref_slice %arg4[%52, %c0_i32_37] : memref<32x128xf32, #tpu.memory_space<any>> -> memref<1x128xf32, #tpu.memory_space<any>>
        %c0_i32_38 = arith.constant 0 : i32
        %54 = tpu.memref_slice %arg6[%45, %49, %c0_i32_38] : memref<2x8x128xf32, #tpu.memory_space<vmem>> -> memref<1x1x128xf32, #tpu.memory_space<vmem>>
        %55 = tpu.memref_squeeze %54 : memref<1x1x128xf32, #tpu.memory_space<vmem>> -> memref<1x128xf32, #tpu.memory_space<vmem>>
        %56 = tpu.memref_slice %arg8[%45] : memref<2x!tpu.dma_semaphore, #tpu.memory_space<semaphore_mem>> -> memref<1x!tpu.dma_semaphore, #tpu.memory_space<semaphore_mem>>
        %57 = tpu.memref_squeeze %56 : memref<1x!tpu.dma_semaphore, #tpu.memory_space<semaphore_mem>> -> memref<!tpu.dma_semaphore, #tpu.memory_space<semaphore_mem>>
        tpu.enqueue_dma source(%53 : memref<1x128xf32, #tpu.memory_space<any>>) target(%55 : memref<1x128xf32, #tpu.memory_space<vmem>>) target_semaphore(%57 : memref<!tpu.dma_semaphore, #tpu.memory_space<semaphore_mem>>)
      }
      %c8_i32_34 = arith.constant 8 : i32
    } else {
    }
    %c8_i32 = arith.constant 8 : i32
    %17 = arith.muli %arg0, %c8_i32 : i32
    %c0_i32_7 = arith.constant 0 : i32
    %c8_i32_8 = arith.constant 8 : i32
    %18 = arith.addi %c0_i32_7, %c8_i32_8 : i32
    %c1_i32_9 = arith.constant 1 : i32
    scf.for %arg9 = %c0_i32_7 to %18 step %c1_i32_9  : i32 {
      %c1_i32_22 = arith.constant 1 : i32
      %34 = arith.muli %arg9, %c1_i32_22 : i32
      %c0_i32_23 = arith.constant 0 : i32
      %35 = arith.addi %c0_i32_23, %34 : i32
      %36 = arith.addi %17, %35 : i32
      %37 = arith.index_cast %36 : i32 to index
      %38 = memref.load %arg1[%37] : memref<24xi32, #tpu.memory_space<smem>>
      %39 = arith.index_cast %38 : i32 to index
      %c0_24 = arith.constant 0 : index
      %40 = vector.load %arg2[%39, %c0_24] : memref<32x8xf32, #tpu.memory_space<vmem>>, vector<1x8xf32>
      %41 = arith.index_cast %35 : i32 to index
      %c0_25 = arith.constant 0 : index
      %42 = vector.load %arg7[%41, %c0_25] : memref<8x8xf32, #tpu.memory_space<vmem>>, vector<1x8xf32>
      tpu.vector_store %arg7[%41, %c0_25], %40 {strides = array<i32>} : memref<8x8xf32, #tpu.memory_space<vmem>>, vector<1x8xf32>,
    }
    %c8_i32_10 = arith.constant 8 : i32
    %c0 = arith.constant 0 : index
    %c0_11 = arith.constant 0 : index
    %19 = vector.load %arg7[%c0, %c0_11] : memref<8x8xf32, #tpu.memory_space<vmem>>, vector<8x8xf32>
    %20 = arith.truncf %19 : vector<8x8xf32> to vector<8x8xbf16>
    %c0_12 = arith.constant 0 : index
    %c0_13 = arith.constant 0 : index
    %21 = vector.load %arg3[%c0_12, %c0_13] : memref<8x128xbf16, #tpu.memory_space<vmem>>, vector<8x128xbf16>
    %cst = arith.constant dense<0.000000e+00> : vector<8x128xf32>
    %22 = tpu.matmul %20, %21, %cst {dimension_numbers = #tpu.dot_dimension_numbers<[1], [0], [0], [1], [0, 0, 1, 1], [], []>} : vector<8x8xbf16>, vector<8x128xbf16>, vector<8x128xf32> -> vector<8x128xf32>
    %c0_i32_14 = arith.constant 0 : i32
    %c0_i32_15 = arith.constant 0 : i32
    %23 = tpu.memref_slice %arg6[%9, %c0_i32_14, %c0_i32_15] : memref<2x8x128xf32, #tpu.memory_space<vmem>> -> memref<1x8x128xf32, #tpu.memory_space<vmem>>
    %24 = tpu.memref_squeeze %23 : memref<1x8x128xf32, #tpu.memory_space<vmem>> -> memref<8x128xf32, #tpu.memory_space<vmem>>
    %c0_i32_16 = arith.constant 0 : i32
    %c0_i32_17 = arith.constant 0 : i32
    %25 = tpu.memref_slice %arg6[%9, %c0_i32_16, %c0_i32_17] : memref<2x8x128xf32, #tpu.memory_space<vmem>> -> memref<1x8x128xf32, #tpu.memory_space<vmem>>
    %26 = tpu.memref_squeeze %25 : memref<1x8x128xf32, #tpu.memory_space<vmem>> -> memref<8x128xf32, #tpu.memory_space<vmem>>
    %27 = tpu.memref_slice %arg8[%9] : memref<2x!tpu.dma_semaphore, #tpu.memory_space<semaphore_mem>> -> memref<1x!tpu.dma_semaphore, #tpu.memory_space<semaphore_mem>>
    %28 = tpu.memref_squeeze %27 : memref<1x!tpu.dma_semaphore, #tpu.memory_space<semaphore_mem>> -> memref<!tpu.dma_semaphore, #tpu.memory_space<semaphore_mem>>
    tpu.wait_dma2 semaphore(%28 : memref<!tpu.dma_semaphore, #tpu.memory_space<semaphore_mem>>) src(%24 : memref<8x128xf32, #tpu.memory_space<vmem>>) dst(%26 : memref<8x128xf32, #tpu.memory_space<vmem>>)
    %29 = arith.index_cast %9 : i32 to index
    %c0_18 = arith.constant 0 : index
    %c0_19 = arith.constant 0 : index
    %30 = vector.load %arg6[%29, %c0_18, %c0_19] : memref<2x8x128xf32, #tpu.memory_space<vmem>>, vector<1x8x128xf32>
    %31 = vector.shape_cast %30 : vector<1x8x128xf32> to vector<8x128xf32>
    %32 = arith.addf %31, %22 : vector<8x128xf32>
    %c0_20 = arith.constant 0 : index
    %c0_21 = arith.constant 0 : index
    %33 = vector.load %arg5[%c0_20, %c0_21] : memref<8x128xf32, #tpu.memory_space<vmem>>, vector<8x128xf32>
    tpu.vector_store %arg5[%c0_20, %c0_21], %32 {strides = array<i32>} : memref<8x128xf32, #tpu.memory_space<vmem>>, vector<8x128xf32>,
    return
  }
  func.func @transform_0(%arg0: i32, %arg1: memref<24xi32, #tpu.memory_space<smem>>) -> (i32, i32) {
    %c0_i32 = arith.constant 0 : i32
    %c0_i32_0 = arith.constant 0 : i32
    %c0_i32_1 = arith.constant 0 : i32
    return %c0_i32, %c0_i32_0 : i32, i32
  }
  func.func @transform_1(%arg0: i32, %arg1: memref<24xi32, #tpu.memory_space<smem>>) -> (i32, i32) {
    %c0_i32 = arith.constant 0 : i32
    %c0_i32_0 = arith.constant 0 : i32
    %c0_i32_1 = arith.constant 0 : i32
    return %c0_i32, %c0_i32_0 : i32, i32
  }
  func.func @transform_3(%arg0: i32, %arg1: memref<24xi32, #tpu.memory_space<smem>>) -> (i32, i32) {
    %c0_i32 = arith.constant 0 : i32
    %c0_i32_0 = arith.constant 0 : i32
    return %arg0, %c0_i32 : i32, i32
  }
}

</mosaic_0001>

<bundles_post_ra>
// kernel: tpu_custom_call.1
= control target key start
LH: loop header
LB: loop body
LE: loop exit
PB: predicated region body
PF: predicated region fallthrough
CT: control target
= control target key end

     0   :  { %s1061_s0 = inlined_call_operand.hbm [shape: s32[24], index: 0, kind: input, shape index: {}]   ;;  %s1062_s1 = inlined_call_operand.hbm [shape: f32[32,8], index: 1, kind: input, shape index: {}]   ;;  %s1063_s2 = inlined_call_operand.hbm [shape: bf16[8,128], index: 2, kind: input, shape index: {}]   ;;  %s1064_s3 = inlined_call_operand.hbm [shape: f32[32,128], index: 3, kind: input, shape index: {}]   ;;  %s1065_s4 = inlined_call_operand.hbm [shape: f32[24,128], index: 4, kind: output, shape index: {}]  }
   0x1   :  { %1071 = sst [smem:[#allocation26_spill]] %s1062_s1  ;;  %s564_s17 = scalar_lea.hbm %s1061_s0, 16 }
   0x2   :  { %1072 = sst [smem:[#allocation27_spill]] %s1063_s2  ;;  %p565_p0 = scmp.ne.s32.totalorder %s1061_s0, %s564_s17 }
   0x3   :  { %p568_p1 = scmp.lt.u32.totalorder %s564_s17, %s1061_s0 }
   0x5   :  { %p570_p2 = pnand %p568_p1, %p565_p0 }
   0x7   :  { %573 = shalt.err (!%p570_p2)  }
   0x8   :  { %s778_s22 = smov [#allocation6]  }
   0x9   :  { %10 = dma.hbm_to_smem %s1061_s0, 16, %s778_s22, [#allocation5] }
   0xa   :  { %734 = dma.done.wait [#allocation5], 16 }
   0xb   :  { %735 = vsyncadd [#allocation5], 4294967280 }
   0xc   :  { %12 = sfence }
   0xd   :  { %13 = vsyncpa [#allocation8], 0 }
   0xe   :  { %14 = vsyncpa [#allocation11], 0 }
   0xf   :  { %15 = vsyncpa [#allocation9], 0 }
  0x10   :  { %17 = vsyncpa [#allocation9 + $0x1], 0  ;;  %s825_s25 = smov 0   ;;  %s827_s26 = smov 0  }
  0x11   :  { %s829_s27 = smov 0   ;;  %s831_s28 = smov 0  }
  0x12 LB: > { %1073 = sst [smem:[#allocation24_spill]] %s760_s27  ;;  %s846_s0 = sadd.s32 4294967295, %s764_s28   ;;  %s764_s28 = sphi %s831_s28, %s1096_s28   ;;  %s760_s27 = sphi %s829_s27, %s1093_s27   ;;  %s756_s26 = sphi %s827_s26, %s1095_s26   ;;  %s752_s25 = sphi %s825_s25, %s1094_s25  }
  0x13   : > { %s436_s29 = sadd.s32 4294967294, %s764_s28   ;;  %s850_s30 = sadd.s32 1, %s764_s28  }
  0x14   : > { %s72_s5 = sadd.s32 1, %s760_s27  ;;  %s69_s6 = ssub.s32 %s764_s28, %s850_s30 }
  0x15   : > { %p82_p3 = scmp.ne.s32.totalorder %s760_s27, %s756_s26  ;;  %p70_p4 = scmp.eq.s32.totalorder %s69_s6, 0 }
  0x16   : > { %p83_p5 = scmp.eq.s32.totalorder %s846_s0, 2  ;;  %p88_p6 = scmp.ne.s32.totalorder %s756_s26, %s752_s25 }
  0x17   : > { %p89_p7 = scmp.eq.s32.totalorder %s436_s29, 2  ;;  %p437_p10 = scmp.ge.s32.totalorder %s764_s28, 1 }
  0x18   : > { %s861_s7 = scalar_select %p70_p4, %s760_s27, %s72_s5  }
  0x19   : > { %p863_p8 = por %p83_p5, %p82_p3  ;;  %p867_p9 = por %p89_p7, %p88_p6 }
  0x1a   : > { %1074 = sst [smem:[#allocation25_spill]] %s861_s7  ;;  %p96_p11 = scmp.lt.s32.totalorder %s764_s28, 4 }
  0x1b   : > { %s1075_s8 = scalar_select %p863_p8, 1, 0 }
  0x1c   : > { %s1076_s9 = scalar_select %p867_p9, 1, 0 }
  0x1d   : > { %p1066_p13 = scmp.eq.s32.totalorder %s846_s0, 0  ;;  %p875_p0 = pnand %p437_p10, %p96_p11 }
  0x1e   : > { %s779_s11 = smov [#allocation7]   ;;  %s780_s14 = smov [#allocation10]  }
  0x1f   : > { %s1077_s10 = scalar_select %p875_p0, 1, 0 }
  0x20   : > { %s108_s12 = sshll.u32 %s779_s11, 4  ;;  %p485_p1 = pneg %p875_p0  ;;  %s109_s12 = int_to_ptr.vmem [resolvable:$true] %s108_s12 }
  0x21   : > { %s122_s15 = sshll.u32 %s780_s14, 4  ;;  %s1079_s1 = sld [smem:[#allocation26_spill]]  ;;  %s887_s15 = int_to_ptr.vmem [resolvable:$true] %s122_s15 }
  0x22   : > { %p883_p2 = pnand %p1066_p13, %p485_p1 }
  0x24   : > { %p576_p4 = pneg %p883_p2 }
  0x27   : > { %s574_s18 = scalar_lea.hbm %s1079_s1, 512 }
  0x28   : > { %p575_p3 = scmp.ne.s32.totalorder %s1079_s1, %s574_s18  ;;  %p581_p7 = scmp.lt.u32.totalorder %s574_s18, %s1079_s1 }
  0x2a   : > { %p577_p5 = pnand %p576_p4, %p575_p3 }
  0x2c   : > { %p578_p6 = pneg %p577_p5 }
  0x2e   : > { %p583_p10 = pnand %p581_p7, %p578_p6 }
  0x30   : > { %586 = shalt.err (!%p583_p10)
}
  0x31   : > { %s587_s23 = scalar_lea.vmem %s109_s12, 512  ;;  %p595_p13 = scmp.lt.s32.totalorder %s109_s12, %s109_s12 }
  0x32   : > { %p588_p11 = scmp.ne.s32.totalorder %s109_s12, %s587_s23  ;;  %p596_p9 = scmp.lt.s32.totalorder %s587_s23, %s587_s23 }
  0x34   : > { %p590_p1 = pnand %p588_p11, %p576_p4  ;;  %p597_p8 = por %p596_p9, %p595_p13 }
  0x36   : > { %p591_p12 = pneg %p590_p1 }
  0x38   : > { %p598_p0 = pnand %p597_p8, %p591_p12 }
  0x3a   : > { %601 = shalt.err (!%p598_p0)
}
  0x3b   : > { %s781_s24 = smov 128   ;;  %s782_s29 = smov 8  }
  0x3c   : > { %488 = dma.hbm_to_vmem [thread:$0]  (!%p883_p2), %s1079_s1, 512, %s109_s12, [#allocation8], %s781_s24, %s781_s24, %s782_s29  }
  0x3d   : > { %s1080_s2 = sld [smem:[#allocation27_spill]] }
  0x43   : > { %s602_s16 = scalar_lea.hbm %s1080_s2, 64 }
  0x44   : > { %p603_p3 = scmp.ne.s32.totalorder %s1080_s2, %s602_s16  ;;  %p609_p12 = scmp.lt.u32.totalorder %s602_s16, %s1080_s2 }
  0x46   : > { %p605_p8 = pnand %p603_p3, %p576_p4 }
  0x48   : > { %p606_p9 = pneg %p605_p8 }
  0x4a   : > { %p611_p13 = pnand %p609_p12, %p606_p9 }
  0x4c   : > { %614 = shalt.err (!%p611_p13)
}
  0x4d   : > { %s615_s12 = scalar_lea.vmem %s887_s15, 64  ;;  %p623_p7 = scmp.lt.s32.totalorder %s887_s15, %s887_s15 }
  0x4e   : > { %p616_p0 = scmp.ne.s32.totalorder %s887_s15, %s615_s12  ;;  %p624_p10 = scmp.lt.s32.totalorder %s615_s12, %s615_s12 }
  0x50   : > { %p618_p5 = pnand %p616_p0, %p576_p4  ;;  %p625_p11 = por %p624_p10, %p623_p7 }
  0x52   : > { %p619_p6 = pneg %p618_p5 }
  0x54   : > { %p626_p1 = pnand %p625_p11, %p619_p6 }
  0x56   : > { %629 = shalt.err (!%p626_p1)
}
  0x57   : > { %491 = dma.hbm_to_vmem [thread:$0]  (!%p883_p2), %s1080_s2, 64, %s887_s15, [#allocation11]  }
  0x58   : > { %p1081_p3 = scmp.ne.s32.totalorder %s1077_s10, 0 }
  0x59   : > { %p1082_p8 = scmp.eq.s32.totalorder (!%p1081_p3), %s846_s0, 0 }
  0x5a   : > { %135 = sbr.rel (%p1081_p3) target bundleno = 469 (0x1d5), region = 28 }
  0x61   : > { %737 = dma.done.wait (%p1082_p8), [#allocation8], 512   ;;  %p1083_p4 = pmov %p1082_p8 }
  0x63   : > { %739 = vsyncadd (%p1083_p4), [#allocation8], 4294966784  ;;  %p1084_p9 = pmov %p1083_p4 }
  0x64   : > { %p1085_p12 = pmov %p1083_p4 }
  0x65   : > { %741 = dma.done.wait (%p1084_p9), [#allocation11], 64  }
  0x66   : > { %743 = vsyncadd (%p1085_p12), [#allocation11], 4294967232  ;;  %s1069_s13 = sand.u32 1, %s756_s26   ;;  %p157_p2 = scmp.lt.s32.totalorder %s846_s0, 0 }
  0x67   : > { %s950_s10 = sshll.u32 %s1069_s13, 3  ;;  %s158_s15 = ssub.s32 0, %s846_s0 }
  0x68   : > { %s444_s23 = smin.u32 %s846_s0, %s158_s15  ;;  %p1086_p0 = scmp.ne.s32.totalorder %s846_s0, 0 }
  0x69   : > { %s160_s24 = sand.u32 1, %s444_s23   ;;  %s959_s11 = smov (!%p1086_p0), 0  }
  0x6a   : > { %s161_s29 = ssub.s32 0, %s160_s24  ;;  %172 = sbr.rel (%p1086_p0) target bundleno = 152 (0x98), region = 40 }
  0x6b   : > { %s1098_s29 = smov (!%p157_p2, %s161_s29), %s160_s24 }
  0x6c   : > { %p446_p13 = scmp.lt.s32.totalorder %s1098_s29, 0  ;;  %s167_s5 = sadd.s32 2, %s1098_s29 }
  0x6e   : > { %s1100_s5 = smov (!%p446_p13, %s167_s5), %s1098_s29 }
  0x71 LB: >> { %s179_s14 = sld [smem:[#allocation6 + %s768_s11]]  ;;  %s182_s16 = scalar_lea.vmem [#allocation2], %s768_s11  ;;  %s768_s11 = sphi %s959_s11, %s178_s11  }
  0x72   : >> { %s190_s17 = sshll.u32 %s182_s16, 4  ;;  %s632_s23 = scalar_lea.hbm %s1064_s3, 512  ;;  %s191_s17 = int_to_ptr.vmem [resolvable:$true] %s190_s17 }
  0x77   : >> { %s448_s18 = sshll.u32 %s179_s14, 4 }
  0x78   : >> { %s181_s12 = scalar_lea.hbm %s1064_s3, %s448_s18 }
  0x79   : >> { %s630_s21 = scalar_lea.hbm %s181_s12, 16  ;;  %p633_p6 = scmp.lt.u32.totalorder %s181_s12, %s1064_s3 }
  0x7a   : >> { %p631_p5 = scmp.ne.s32.totalorder %s181_s12, %s630_s21  ;;  %p634_p7 = scmp.lt.u32.totalorder %s632_s23, %s630_s21 }
  0x7b   : >> { %p636_p11 = scmp.lt.u32.totalorder %s630_s21, %s181_s12 }
  0x7c   : >> { %p635_p10 = por %p634_p7, %p633_p6 }
  0x7e   : >> { %p637_p1 = por %p636_p11, %p635_p10 }
  0x80   : >> { %p638_p3 = pnand %p637_p1, %p631_p5 }
  0x82   : >> { %641 = shalt.err (!%p638_p3)  }
  0x83   : >> { %s642_s14 = scalar_lea.vmem %s191_s17, 16  ;;  %s783_s16 = smov [#allocation2]  }
  0x84   : >> { %p643_p8 = scmp.ne.s32.totalorder %s191_s17, %s642_s14  ;;  %s644_s18 = sshll.u32 %s783_s16, 4  ;;  %s645_s18 = int_to_ptr.vmem [resolvable:$false] %s644_s18 }
  0x85   : >> { %s646_s19 = scalar_lea.vmem %s645_s18, 256  ;;  %p647_p4 = scmp.lt.s32.totalorder %s191_s17, %s645_s18 }
  0x86   : >> { %p648_p9 = scmp.lt.s32.totalorder %s646_s19, %s642_s14 }
  0x88   : >> { %p649_p12 = por %p648_p9, %p647_p4 }
  0x8a   : >> { %p650_p2 = pnand %p649_p12, %p643_p8 }
  0x8c   : >> { %653 = shalt.err (!%p650_p2)  }
  0x8d   : >> { %193 = dma.hbm_to_vmem [thread:$0]  %s181_s12, 16, %s191_s17, [#allocation4] }
  0x8e   : >> { %s178_s11 = sadd.s32 1, %s768_s11  }
  0x8f   : >> { %p175_p13 = scmp.ge.s32.totalorder %s178_s11, 8  }
  0x91   : > { %177 = sbr.rel (!%p175_p13) target bundleno = 113 (0x71), region = 116 }
  0x98 PF: > { %s194_s20 = sadd.s32 1, %s846_s0 }
  0x99   : > { %p449_p0 = scmp.ge.s32.totalorder %s194_s20, 3 }
  0x9a   : > { %p199_p5 = scmp.lt.s32.totalorder (!%p449_p0), %s194_s20, 0  ;;  %s200_s21 = ssub.s32 (!%p449_p0), 0, %s194_s20 }
  0x9b   : > { %198 = sbr.rel (%p449_p0) target bundleno = 206 (0xce), region = 55  ;;  %s450_s22 = smin.u32 (!%p449_p0), %s200_s21, %s194_s20 }
  0x9c   : > { %s465_s15 = sshll.u32 (!%p449_p0), %s846_s0, 3  ;;  %s202_s23 = sand.u32 (!%p449_p0), 1, %s450_s22  }
  0x9d   : > { %s980_s24 = sadd.s32 (!%p449_p0), 8, %s465_s15  ;;  %s203_s17 = ssub.s32 (!%p449_p0), 0, %s202_s23 }
  0x9e   : > { %s984_s11 = smov (!%p449_p0), 0  }
  0xa2   : > { %s1102_s17 = smov (!%p199_p5, %s203_s17), %s202_s23 }
  0xa3   : > { %p452_p6 = scmp.lt.s32.totalorder %s1102_s17, 0  ;;  %s209_s12 = sadd.s32 2, %s1102_s17 }
  0xa5   : > { %s1104_s12 = smov (!%p452_p6, %s209_s12), %s1102_s17 }
  0xa6 LB: >> { %s455_s29 = sshll.u32 %s1104_s12, 3  ;;  %s218_s14 = sadd.s32 %s772_s11, %s980_s24  ;;  %s772_s11 = sphi %s984_s11, %s217_s11  }
  0xa7   : >> { %s223_s16 = sadd.s32 %s772_s11, %s455_s29  ;;  %s219_s18 = sld [smem:[#allocation6 + %s218_s14]] }
  0xa8   : >> { %s224_s19 = scalar_lea.vmem [#allocation2], %s223_s16  ;;  %s225_s17 = scalar_lea.sflag [#allocation4], %s1104_s12 }
  0xa9   : >> { %s233_s20 = sshll.u32 %s224_s19, 4  ;;  %s656_s2 = scalar_lea.hbm %s1064_s3, 512  ;;  %s234_s20 = int_to_ptr.vmem [resolvable:$true] %s233_s20 }
  0xad   : >> { %s454_s21 = sshll.u32 %s219_s18, 4 }
  0xae   : >> { %s221_s23 = scalar_lea.hbm %s1064_s3, %s454_s21 }
  0xaf   : >> { %s654_s13 = scalar_lea.hbm %s221_s23, 16  ;;  %p657_p10 = scmp.lt.u32.totalorder %s221_s23, %s1064_s3 }
  0xb0   : >> { %p655_p7 = scmp.ne.s32.totalorder %s221_s23, %s654_s13  ;;  %p658_p11 = scmp.lt.u32.totalorder %s656_s2, %s654_s13 }
  0xb1   : >> { %p660_p3 = scmp.lt.u32.totalorder %s654_s13, %s221_s23 }
  0xb2   : >> { %p659_p1 = por %p658_p11, %p657_p10 }
  0xb4   : >> { %p661_p8 = por %p660_p3, %p659_p1 }
  0xb6   : >> { %p662_p4 = pnand %p661_p8, %p655_p7 }
  0xb8   : >> { %665 = shalt.err (!%p662_p4)  }
  0xb9   : >> { %s666_s29 = scalar_lea.vmem %s234_s20, 16  ;;  %s784_s14 = smov [#allocation2]  }
  0xba   : >> { %p667_p9 = scmp.ne.s32.totalorder %s234_s20, %s666_s29  ;;  %s668_s16 = sshll.u32 %s784_s14, 4  ;;  %s669_s16 = int_to_ptr.vmem [resolvable:$false] %s668_s16 }
  0xbb   : >> { %s670_s18 = scalar_lea.vmem %s669_s16, 256  ;;  %p671_p12 = scmp.lt.s32.totalorder %s234_s20, %s669_s16 }
  0xbc   : >> { %p672_p2 = scmp.lt.s32.totalorder %s670_s18, %s666_s29 }
  0xbe   : >> { %p673_p13 = por %p672_p2, %p671_p12 }
  0xc0   : >> { %p674_p0 = pnand %p673_p13, %p667_p9 }
  0xc2   : >> { %677 = shalt.err (!%p674_p0)  }
  0xc3   : >> { %236 = dma.hbm_to_vmem [thread:$0]  %s221_s23, 16, %s234_s20, %s225_s17 }
  0xc4   : >> { %s217_s11 = sadd.s32 1, %s772_s11  }
  0xc5   : >> { %p214_p5 = scmp.ge.s32.totalorder %s217_s11, 8  }
  0xc7   : > { %216 = sbr.rel (!%p214_p5) target bundleno = 166 (0xa6), region = 127 }
  0xce PF: > { %s456_s1 = sshll.u32 %s846_s0, 3  ;;  %s774_s2 = smov 0  }
  0xcf LB: >> { %s244_s27 = sadd.s32 %s776_s2, %s456_s1  ;;  %vm249_vm0 = vcmask 57344   ;;  %s248_s6 = scalar_lea.vmem [#allocation3], %s776_s2  ;;  %s776_s2 = sphi %s774_s2, %s243_s2  }
  0xd0   : >> { %s245_s7 = sld [smem:[#allocation6 + %s244_s27]]  ;;  %s243_s2 = sadd.s32 1, %s776_s2  }
  0xd1   : >> { %p240_p6 = scmp.ge.s32.totalorder %s243_s2, 8  }
  0xd2   : > { %v253_v1 = vld [vmem:[#allocation10] sm:$0xf] (%p240_p6)  ;;  %vm258_vm1 = vcmask (%p240_p6), 1043456   ;;  %v785_v3 = vmov (%p240_p6), 0.0   ;;  %vm786_vm2 = vmmov (%p240_p6), 0   ;;  %vm254_vm3 = vcmask (%p240_p6), 64512  }
  0xd3   : > { %242 = sbr.rel (!%p240_p6) target bundleno = 207 (0xcf), region = 138  ;;  %469 = vmatprep.subr.bf16.mxu0 (%p240_p6), %v785_v3  ;;  %v260_v4 = vsel (%p240_p6), %vm258_vm1, %v253_v1, 0  ;;  %471 = vmatprep.mubr.msk.bf16.mxu0 (%p240_p6), %vm786_vm2, %v785_v3  ;;  %s458_s24 = sshll.u32 (%p240_p6), %s1100_s5, 3 }
  0xd4   : > { %470 = vmatpush3.bf16.msra.mxu0 (%p240_p6), %v260_v4  ;;  %s303_s12 = scalar_lea.vmem (%p240_p6), [#allocation2], %s458_s24  ;;  %s304_s11 = scalar_lea.sflag (%p240_p6), [#allocation4], %s1100_s5 }
  0xd6   : >> { %s246_s13 = scalar_lea.vmem [#allocation7], %s245_s7 }
  0xd7   : >> { %v247_v0 = vld [vmem:[%s246_s13] sm:$0x1] }
  0xd8   : >> { %250 = vst.msk [vmem:[%s248_s6] sm:$0x1] %vm249_vm0, %v247_v0 }
  0xdf   : > { %v251_v2 = vld [vmem:[#allocation3] sm:$0xff] }
  0xe0   : > { %v252_v5 = vpack.c.bf16 %v251_v2, %v251_v2 }
  0xe2   : > { %472 = vmatmul.mubr.msk.bf16.vlgmr.msra.gmra.mrb[0].mxu0 %vm254_vm3, %v252_v5 }
 0x1b5   : > { %v296_v6 = vpop.f32.mrb[0].mxu0 }
 0x1b6   : > { %v473_v7 = vpop.f32.mrb[1].mxu0 }
 0x1b7   : > { %v299_v8 = vpop.f32.mrb[2].mxu0 }
 0x1b8   : > { %v474_v9 = vpop.f32.mrb[3].mxu0 }
 0x1b9   : > { %744 = dma.done.wait %s304_s11, 128 }
 0x1ba   : > { %745 = vsyncadd %s304_s11, 4294967168  ;;  %s460_s19 = sshll.u32 %s846_s0, 7  ;;  %s1087_s20 = scalar_lea.vmem [#allocation12], %s950_s10  ;;  %v308_v10 = vld [vmem:[%s303_s12] sm:$0xff] }
 0x1bb   : > { %s325_s21 = sshll.u32 %s1087_s20, 4  ;;  %v309_v11 = vadd.f32 %v308_v10, %v296_v6  ;;  %s1015_s23 = scalar_lea.hbm %s1065_s4, %s460_s19  ;;  %s1017_s21 = int_to_ptr.vmem [resolvable:$true] %s325_s21 }
 0x1bc   : > { %s1088_s5 = smov %s1087_s20  ;;  %s1089_s17 = sand.u32 1, %s756_s26  }
 0x1bd   : > { %310 = vst [vmem:[%s1088_s5] sm:$0xff] %v309_v11  ;;  %s312_s29 = scalar_lea.sflag [#allocation9], %s1089_s17  ;;  %s678_s14 = scalar_lea.vmem %s1017_s21, 128 }
 0x1be   : > { %p679_p7 = scmp.ne.s32.totalorder %s1017_s21, %s678_s14  ;;  %p1090_p10 = scmp.ne.s32.totalorder %s1075_s8, 0 }
 0x1bf   : > { %s787_s0 = smov [#allocation12]  }
 0x1c0   : > { %p680_p11 = pnand %p679_p7, %p1090_p10  ;;  %s682_s16 = sshll.u32 %s787_s0, 4  ;;  %s683_s16 = int_to_ptr.vmem [resolvable:$false] %s682_s16 }
 0x1c1   : > { %s684_s18 = scalar_lea.vmem %s683_s16, 256  ;;  %p685_p3 = scmp.lt.s32.totalorder %s1017_s21, %s683_s16 }
 0x1c2   : > { %p681_p1 = pneg %p680_p11  ;;  %p686_p8 = scmp.lt.s32.totalorder %s684_s18, %s678_s14 }
 0x1c4   : > { %p687_p4 = por %p686_p8, %p685_p3 }
 0x1c6   : > { %p688_p9 = pnand %p687_p4, %p681_p1 }
 0x1c8   : > { %691 = shalt.err (!%p688_p9)
}
 0x1c9   : > { %s692_s10 = scalar_lea.hbm %s1015_s23, 128  ;;  %s696_s27 = scalar_lea.hbm %s1065_s4, 384 }
 0x1ca   : > { %p693_p12 = scmp.ne.s32.totalorder %s1015_s23, %s692_s10  ;;  %p697_p0 = scmp.lt.u32.totalorder %s1015_s23, %s1065_s4 }
 0x1cb   : > { %p698_p5 = scmp.lt.u32.totalorder %s696_s27, %s692_s10  ;;  %p700_p7 = scmp.lt.u32.totalorder %s692_s10, %s1015_s23 }
 0x1cc   : > { %p694_p2 = pnand %p693_p12, %p1090_p10 }
 0x1cd   : > { %p699_p6 = por %p698_p5, %p697_p0 }
 0x1ce   : > { %p695_p13 = pneg %p694_p2 }
 0x1cf   : > { %p701_p11 = por %p700_p7, %p699_p6 }
 0x1d1   : > { %p702_p1 = pnand %p701_p11, %p695_p13 }
 0x1d3   : > { %705 = shalt.err (!%p702_p1)
}
 0x1d4   : > { %483 = dma.vmem_to_hbm [thread:$0]  (%p1090_p10), %s1017_s21, 128, %s1015_s23, %s312_s29  }
 0x1d5 PF: > { %p500_p3 = scmp.ge.s32.totalorder %s764_s28, 2  ;;  %s337_s6 = sand.u32 1, %s752_s25  }
 0x1d6   : > { %p1091_p8 = scmp.ne.s32.totalorder %s1076_s9, 0  ;;  %s338_s24 = scalar_lea.sflag [#allocation9], %s337_s6 }
 0x1d8   : > { %p493_p4 = pnand %p500_p3, %p1091_p8 }
 0x1da   : > { %747 = dma.done.wait (!%p493_p4), %s338_s24, 128  }
 0x1db   : > { %749 = vsyncadd (!%p493_p4), %s338_s24, 4294967168  ;;  %s1092_s12 = sld [smem:[#allocation24_spill]]  ;;  %s1093_s27 = sld [smem:[#allocation25_spill]] }
 0x1dc   : > { %p20_p9 = scmp.ge.s32.totalorder %s850_s30, 5   ;;  %s1094_s25 = smov %s756_s26 }
 0x1dd   : > { %s1096_s28 = smov %s850_s30 }
 0x1de   :  { %22 = sbr.rel (!%p20_p9) target bundleno = 18 (0x12), region = 149 }
 0x1e1   : > { %s1095_s26 = smov %s1092_s12 }
 0x1e5   :  { %343 = vsyncpa [#allocation8], 1 }
 0x1e6   :  { %345 = vsyncpa [#allocation8 + $0x1], 1 }
 0x1e7   :  { %346 = vsyncpa [#allocation11], 1 }
 0x1e8   :  { %347 = vsyncpa [#allocation9], 1 }
 0x1e9   :  { %349 = vsyncpa [#allocation9 + $0x1], 1 }
 0x1ea   :  { %350 = vsyncmov [#allocation4] }
 0x1ed   :  { %s351_s28 = vpop.sfrf %350 }
 0x1ee   :  { %p463_p10 = scmp.ne.s32.totalorder %s351_s28, 0 }
 0x1f0   :  { %355 = shalt.err (%p463_p10)  }
 0x1f1   :  { %357 = vsyncmov [#allocation4 + $0x1] }
 0x1f4   :  { %s358_s8 = vpop.sfrf %357 }
 0x1f5   :  { %p464_p12 = scmp.ne.s32.totalorder %s358_s8, 0 }
 0x1f7   :  { %362 = shalt.err (%p464_p12)  }

</bundles_post_ra>
